<compile_context>
chip_gen: v7x
topology: tpu7x:2x2x1
jax: 0.10.0
libtpu: 0.0.40
codegen_flags: <defaults>
</compile_context>

<pallas_src>
import jax
import jax.numpy as jnp
from jax.experimental import pallas as pl
from jax.experimental.pallas import tpu as pltpu

BATCH = 8
HIDDEN = 32
VOCAB = 16
N_LAYERS = 3  # number of times the single-layer GRU is re-applied (as in the module)


def decoder_kernel(ids_ref, h_ref, tbl_gi_ref, whh_ref, bhh_ref,
                   wcat_ref, bcat_ref, wout_ref, bout_ref,
                   out_ref, hout_ref):
    """3 GRU-cell steps (gather + first input-matmul fused) + Linear + LogSoftmax in VMEM."""
    H = HIDDEN
    B = ids_ref.shape[0]
    V = tbl_gi_ref.shape[0]

    h = h_ref[...]                                            # (B, H) initial hidden

    # ---- Layer 1: embedding lookup fused into the input transform -------------------
    # onehot(ids) @ (emb @ W_ih^T + b_ih)  ==  emb[ids] @ W_ih^T + b_ih   (exact: one-hot)
    ids = ids_ref[...]                                        # (B, 1) int32
    onehot = (jax.lax.broadcasted_iota(jnp.int32, (B, V), 1) == ids).astype(jnp.float32)
    gi = jnp.dot(onehot, tbl_gi_ref[...],
                 preferred_element_type=jnp.float32)          # (B, 3H), bias included
    gh = jnp.dot(h, whh_ref[...],
                 preferred_element_type=jnp.float32) + bhh_ref[...]
    r = jax.nn.sigmoid(gi[:, 0:H] + gh[:, 0:H])
    z = jax.nn.sigmoid(gi[:, H:2 * H] + gh[:, H:2 * H])
    n = jnp.tanh(gi[:, 2 * H:3 * H] + r * gh[:, 2 * H:3 * H])
    h = (1.0 - z) * n + z * h

    # ---- Layers 2..N: input == hidden, so one fused (B,H)@(H,6H) matmul per layer ----
    wcat = wcat_ref[...]                                      # (H, 6H) = [W_ih^T | W_hh^T]
    bcat = jnp.broadcast_to(bcat_ref[...], (B, 6 * H))        # hoisted broadcast
    for _ in range(N_LAYERS - 1):
        g = jnp.dot(h, wcat, preferred_element_type=jnp.float32) + bcat   # (B, 6H)
        gi = g[:, 0:3 * H]
        gh = g[:, 3 * H:6 * H]
        r = jax.nn.sigmoid(gi[:, 0:H] + gh[:, 0:H])
        z = jax.nn.sigmoid(gi[:, H:2 * H] + gh[:, H:2 * H])
        n = jnp.tanh(gi[:, 2 * H:3 * H] + r * gh[:, 2 * H:3 * H])
        h = (1.0 - z) * n + z * h

    # ---- Linear + LogSoftmax over the vocab dim --------------------------------------
    logits = jnp.dot(h, wout_ref[...], preferred_element_type=jnp.float32) + bout_ref[...]
    m = jnp.max(logits, axis=-1, keepdims=True)
    lse = m + jnp.log(jnp.sum(jnp.exp(logits - m), axis=-1, keepdims=True))
    out_ref[...] = logits - lse
    hout_ref[...] = h


def make_params(key):
    """Deterministic parameter init (shapes match DecoderRNN(hidden=32, output=16))."""
    ks = jax.random.split(key, 8)
    bound = 1.0 / jnp.sqrt(jnp.float32(HIDDEN))
    u = lambda k, shape: jax.random.uniform(k, shape, jnp.float32, -bound, bound)
    return {
        "emb_weight": jax.random.normal(ks[0], (VOCAB, HIDDEN), jnp.float32),
        "w_ih_t": u(ks[1], (HIDDEN, 3 * HIDDEN)),   # weight_ih_l0.T
        "w_hh_t": u(ks[2], (HIDDEN, 3 * HIDDEN)),   # weight_hh_l0.T
        "b_ih": u(ks[3], (1, 3 * HIDDEN)),
        "b_hh": u(ks[4], (1, 3 * HIDDEN)),
        "w_out_t": u(ks[5], (HIDDEN, VOCAB)),       # out.weight.T
        "b_out": u(ks[6], (1, VOCAB)),
    }


def prepare_params(params):
    """One-time fusion of parameters into kernel-side tables (done outside the hot path)."""
    return {
        # (V, 3H): embedding row -> layer-1 input-gate pre-activation (bias folded in).
        "tbl_gi": params["emb_weight"] @ params["w_ih_t"] + params["b_ih"],
        "w_hh_t": params["w_hh_t"],                                  # (H, 3H)
        "b_hh": params["b_hh"],                                      # (1, 3H)
        "w_cat": jnp.concatenate([params["w_ih_t"], params["w_hh_t"]], axis=1),  # (H, 6H)
        "b_cat": jnp.concatenate([params["b_ih"], params["b_hh"]], axis=1),      # (1, 6H)
        "w_out_t": params["w_out_t"],                                # (H, V)
        "b_out": params["b_out"],                                    # (1, V)
    }


def decoder_forward(token_ids, hidden, prepared):
    """token_ids: (B,) int32, hidden: (1, B, H) f32 -> (logprobs (B, V), hidden (1, B, H))."""
    B, H, V = BATCH, HIDDEN, VOCAB
    ids2d = token_ids.reshape(B, 1).astype(jnp.int32)
    h0 = hidden[0]                                              # (B, H)

    # Advisory cost estimate so XLA can schedule/overlap this sub-microsecond call.
    flops = (2 * B * V * 3 * H                     # onehot @ tbl_gi   (layer 1 gi)
             + 2 * B * H * 3 * H                   # h @ W_hh^T        (layer 1 gh)
             + (N_LAYERS - 1) * 2 * B * H * 6 * H  # fused layers 2..N
             + 2 * B * H * V                       # output projection
             + N_LAYERS * 10 * B * H)              # gate elementwise
    transcendentals = N_LAYERS * 3 * B * H + B * (V + 1)
    bytes_accessed = 4 * (B * 1 + B * H
                          + V * 3 * H + H * 3 * H + 3 * H
                          + H * 6 * H + 6 * H
                          + H * V + V
                          + B * V + B * H)

    vspec = pl.BlockSpec(memory_space=pltpu.MemorySpace.VMEM)
    logprobs, h_out = pl.pallas_call(
        decoder_kernel,
        out_shape=(
            jax.ShapeDtypeStruct((B, V), jnp.float32),
            jax.ShapeDtypeStruct((B, H), jnp.float32),
        ),
        in_specs=[vspec] * 9,
        out_specs=(vspec, vspec),
        cost_estimate=pl.CostEstimate(flops=flops,
                                      transcendentals=transcendentals,
                                      bytes_accessed=bytes_accessed),
    )(
        ids2d, h0,
        prepared["tbl_gi"], prepared["w_hh_t"], prepared["b_hh"],
        prepared["w_cat"], prepared["b_cat"],
        prepared["w_out_t"], prepared["b_out"],
    )
    return logprobs, h_out[None, :, :]


def reference_forward(token_ids, hidden, params):
    """Pure-JAX reference (mirrors PyTorch GRU / Linear / LogSoftmax math)."""
    H = HIDDEN
    x = params["emb_weight"][token_ids]
    h = hidden[0]
    for _ in range(N_LAYERS):
        gi = x @ params["w_ih_t"] + params["b_ih"]
        gh = h @ params["w_hh_t"] + params["b_hh"]
        r = jax.nn.sigmoid(gi[:, :H] + gh[:, :H])
        z = jax.nn.sigmoid(gi[:, H:2 * H] + gh[:, H:2 * H])
        n = jnp.tanh(gi[:, 2 * H:] + r * gh[:, 2 * H:])
        h = (1.0 - z) * n + z * h
        x = h
    logits = h @ params["w_out_t"] + params["b_out"]
    return jax.nn.log_softmax(logits, axis=-1), h[None]


if __name__ == "__main__":
    key = jax.random.PRNGKey(0)
    k_ids, k_params, k_h = jax.random.split(key, 3)

    token_ids = jax.random.randint(k_ids, (BATCH,), 0, VOCAB, dtype=jnp.int32)
    params = make_params(k_params)
    prepared = prepare_params(params)

    # Case 1: DecoderRNN.initHidden (zeros), as in the module.
    hidden0 = jnp.zeros((1, BATCH, HIDDEN), jnp.float32)
    logprobs, hidden_out = decoder_forward(token_ids, hidden0, prepared)
    jax.block_until_ready((logprobs, hidden_out))
    ref_lp, ref_h = reference_forward(token_ids, hidden0, params)
    assert logprobs.shape == (BATCH, VOCAB) and hidden_out.shape == (1, BATCH, HIDDEN)
    assert jnp.allclose(logprobs, ref_lp, atol=1e-2, rtol=1e-2)
    assert jnp.allclose(hidden_out, ref_h, atol=1e-2, rtol=1e-2)

    # Case 2: random carried hidden (exercises the full recurrence path).
    hidden1 = 0.5 * jax.random.normal(k_h, (1, BATCH, HIDDEN), jnp.float32)
    logprobs1, hidden_out1 = decoder_forward(token_ids, hidden1, prepared)
    jax.block_until_ready((logprobs1, hidden_out1))
    ref_lp1, ref_h1 = reference_forward(token_ids, hidden1, params)
    assert jnp.allclose(logprobs1, ref_lp1, atol=1e-2, rtol=1e-2)
    assert jnp.allclose(hidden_out1, ref_h1, atol=1e-2, rtol=1e-2)

    print("KERNEL_OK")
</pallas_src>

<mosaic_0001>
module attributes {stable_mosaic.version = 11 : i64} {
  func.func @decoder_kernel(%arg0: memref<8x1xi32, #tpu.memory_space<vmem>>, %arg1: memref<8x32xf32, #tpu.memory_space<vmem>>, %arg2: memref<16x96xf32, #tpu.memory_space<vmem>>, %arg3: memref<32x96xf32, #tpu.memory_space<vmem>>, %arg4: memref<1x96xf32, #tpu.memory_space<vmem>>, %arg5: memref<32x192xf32, #tpu.memory_space<vmem>>, %arg6: memref<1x192xf32, #tpu.memory_space<vmem>>, %arg7: memref<32x16xf32, #tpu.memory_space<vmem>>, %arg8: memref<1x16xf32, #tpu.memory_space<vmem>>, %arg9: memref<8x16xf32, #tpu.memory_space<vmem>>, %arg10: memref<8x32xf32, #tpu.memory_space<vmem>>) attributes {dimension_semantics = [], scalar_prefetch = 0 : i64, scratch_operands = 0 : i64, tpu.core_type = #tpu.core_type<tc>} {
    %c0 = arith.constant 0 : index
    %c0_0 = arith.constant 0 : index
    %0 = vector.load %arg1[%c0, %c0_0] : memref<8x32xf32, #tpu.memory_space<vmem>>, vector<8x32xf32>
    %c0_1 = arith.constant 0 : index
    %c0_2 = arith.constant 0 : index
    %1 = vector.load %arg0[%c0_1, %c0_2] : memref<8x1xi32, #tpu.memory_space<vmem>>, vector<8x1xi32>
    %2 = tpu.iota {dimensions = array<i32: 1>} : vector<8x16xi32>
    %3 = vector.broadcast %1 : vector<8x1xi32> to vector<8x16xi32>
    %4 = arith.cmpi eq, %2, %3 : vector<8x16xi32>
    %5 = arith.extui %4 : vector<8x16xi1> to vector<8x16xi32>
    %6 = arith.sitofp %5 : vector<8x16xi32> to vector<8x16xf32>
    %c0_3 = arith.constant 0 : index
    %c0_4 = arith.constant 0 : index
    %7 = vector.load %arg2[%c0_3, %c0_4] : memref<16x96xf32, #tpu.memory_space<vmem>>, vector<16x96xf32>
    %cst = arith.constant dense<0.000000e+00> : vector<8x96xf32>
    %8 = tpu.matmul %6, %7, %cst {dimension_numbers = #tpu.dot_dimension_numbers<[1], [0], [0], [1], [0, 0, 1, 1], [], []>} : vector<8x16xf32>, vector<16x96xf32>, vector<8x96xf32> -> vector<8x96xf32>
    %c0_5 = arith.constant 0 : index
    %c0_6 = arith.constant 0 : index
    %9 = vector.load %arg3[%c0_5, %c0_6] : memref<32x96xf32, #tpu.memory_space<vmem>>, vector<32x96xf32>
    %cst_7 = arith.constant dense<0.000000e+00> : vector<8x96xf32>
    %10 = tpu.matmul %0, %9, %cst_7 {dimension_numbers = #tpu.dot_dimension_numbers<[1], [0], [0], [1], [0, 0, 1, 1], [], []>} : vector<8x32xf32>, vector<32x96xf32>, vector<8x96xf32> -> vector<8x96xf32>
    %c0_8 = arith.constant 0 : index
    %c0_9 = arith.constant 0 : index
    %11 = vector.load %arg4[%c0_8, %c0_9] : memref<1x96xf32, #tpu.memory_space<vmem>>, vector<1x96xf32>
    %12 = vector.broadcast %11 : vector<1x96xf32> to vector<8x96xf32>
    %13 = arith.addf %10, %12 : vector<8x96xf32>
    %14 = vector.extract_strided_slice %8 {offsets = [0, 0], sizes = [8, 32], strides = [1, 1]} : vector<8x96xf32> to vector<8x32xf32>
    %15 = vector.extract_strided_slice %13 {offsets = [0, 0], sizes = [8, 32], strides = [1, 1]} : vector<8x96xf32> to vector<8x32xf32>
    %16 = arith.addf %14, %15 : vector<8x32xf32>
    %17 = arith.negf %16 : vector<8x32xf32>
    %18 = math.exp %17 : vector<8x32xf32>
    %cst_10 = arith.constant 1.000000e+00 : f32
    %19 = vector.broadcast %cst_10 : f32 to vector<8x32xf32>
    %20 = arith.addf %19, %18 : vector<8x32xf32>
    %21 = arith.divf %19, %20 : vector<8x32xf32>
    %22 = vector.extract_strided_slice %8 {offsets = [0, 32], sizes = [8, 32], strides = [1, 1]} : vector<8x96xf32> to vector<8x32xf32>
    %23 = vector.extract_strided_slice %13 {offsets = [0, 32], sizes = [8, 32], strides = [1, 1]} : vector<8x96xf32> to vector<8x32xf32>
    %24 = arith.addf %22, %23 : vector<8x32xf32>
    %25 = arith.negf %24 : vector<8x32xf32>
    %26 = math.exp %25 : vector<8x32xf32>
    %cst_11 = arith.constant 1.000000e+00 : f32
    %27 = vector.broadcast %cst_11 : f32 to vector<8x32xf32>
    %28 = arith.addf %27, %26 : vector<8x32xf32>
    %29 = arith.divf %27, %28 : vector<8x32xf32>
    %30 = vector.extract_strided_slice %8 {offsets = [0, 64], sizes = [8, 32], strides = [1, 1]} : vector<8x96xf32> to vector<8x32xf32>
    %31 = vector.extract_strided_slice %13 {offsets = [0, 64], sizes = [8, 32], strides = [1, 1]} : vector<8x96xf32> to vector<8x32xf32>
    %32 = arith.mulf %21, %31 : vector<8x32xf32>
    %33 = arith.addf %30, %32 : vector<8x32xf32>
    %34 = math.tanh %33 : vector<8x32xf32>
    %cst_12 = arith.constant 1.000000e+00 : f32
    %35 = vector.broadcast %cst_12 : f32 to vector<8x32xf32>
    %36 = arith.subf %35, %29 : vector<8x32xf32>
    %37 = arith.mulf %36, %34 : vector<8x32xf32>
    %38 = arith.mulf %29, %0 : vector<8x32xf32>
    %39 = arith.addf %37, %38 : vector<8x32xf32>
    %c0_13 = arith.constant 0 : index
    %c0_14 = arith.constant 0 : index
    %40 = vector.load %arg5[%c0_13, %c0_14] : memref<32x192xf32, #tpu.memory_space<vmem>>, vector<32x192xf32>
    %c0_15 = arith.constant 0 : index
    %c0_16 = arith.constant 0 : index
    %41 = vector.load %arg6[%c0_15, %c0_16] : memref<1x192xf32, #tpu.memory_space<vmem>>, vector<1x192xf32>
    %42 = vector.shape_cast %41 : vector<1x192xf32> to vector<1x192xf32>
    %43 = vector.broadcast %42 : vector<1x192xf32> to vector<8x192xf32>
    %cst_17 = arith.constant dense<0.000000e+00> : vector<8x192xf32>
    %44 = tpu.matmul %39, %40, %cst_17 {dimension_numbers = #tpu.dot_dimension_numbers<[1], [0], [0], [1], [0, 0, 1, 1], [], []>} : vector<8x32xf32>, vector<32x192xf32>, vector<8x192xf32> -> vector<8x192xf32>
    %45 = arith.addf %44, %43 : vector<8x192xf32>
    %46 = vector.extract_strided_slice %45 {offsets = [0, 0], sizes = [8, 96], strides = [1, 1]} : vector<8x192xf32> to vector<8x96xf32>
    %47 = vector.extract_strided_slice %45 {offsets = [0, 96], sizes = [8, 96], strides = [1, 1]} : vector<8x192xf32> to vector<8x96xf32>
    %48 = vector.extract_strided_slice %46 {offsets = [0, 0], sizes = [8, 32], strides = [1, 1]} : vector<8x96xf32> to vector<8x32xf32>
    %49 = vector.extract_strided_slice %47 {offsets = [0, 0], sizes = [8, 32], strides = [1, 1]} : vector<8x96xf32> to vector<8x32xf32>
    %50 = arith.addf %48, %49 : vector<8x32xf32>
    %51 = arith.negf %50 : vector<8x32xf32>
    %52 = math.exp %51 : vector<8x32xf32>
    %cst_18 = arith.constant 1.000000e+00 : f32
    %53 = vector.broadcast %cst_18 : f32 to vector<8x32xf32>
    %54 = arith.addf %53, %52 : vector<8x32xf32>
    %55 = arith.divf %53, %54 : vector<8x32xf32>
    %56 = vector.extract_strided_slice %46 {offsets = [0, 32], sizes = [8, 32], strides = [1, 1]} : vector<8x96xf32> to vector<8x32xf32>
    %57 = vector.extract_strided_slice %47 {offsets = [0, 32], sizes = [8, 32], strides = [1, 1]} : vector<8x96xf32> to vector<8x32xf32>
    %58 = arith.addf %56, %57 : vector<8x32xf32>
    %59 = arith.negf %58 : vector<8x32xf32>
    %60 = math.exp %59 : vector<8x32xf32>
    %cst_19 = arith.constant 1.000000e+00 : f32
    %61 = vector.broadcast %cst_19 : f32 to vector<8x32xf32>
    %62 = arith.addf %61, %60 : vector<8x32xf32>
    %63 = arith.divf %61, %62 : vector<8x32xf32>
    %64 = vector.extract_strided_slice %46 {offsets = [0, 64], sizes = [8, 32], strides = [1, 1]} : vector<8x96xf32> to vector<8x32xf32>
    %65 = vector.extract_strided_slice %47 {offsets = [0, 64], sizes = [8, 32], strides = [1, 1]} : vector<8x96xf32> to vector<8x32xf32>
    %66 = arith.mulf %55, %65 : vector<8x32xf32>
    %67 = arith.addf %64, %66 : vector<8x32xf32>
    %68 = math.tanh %67 : vector<8x32xf32>
    %cst_20 = arith.constant 1.000000e+00 : f32
    %69 = vector.broadcast %cst_20 : f32 to vector<8x32xf32>
    %70 = arith.subf %69, %63 : vector<8x32xf32>
    %71 = arith.mulf %70, %68 : vector<8x32xf32>
    %72 = arith.mulf %63, %39 : vector<8x32xf32>
    %73 = arith.addf %71, %72 : vector<8x32xf32>
    %cst_21 = arith.constant dense<0.000000e+00> : vector<8x192xf32>
    %74 = tpu.matmul %73, %40, %cst_21 {dimension_numbers = #tpu.dot_dimension_numbers<[1], [0], [0], [1], [0, 0, 1, 1], [], []>} : vector<8x32xf32>, vector<32x192xf32>, vector<8x192xf32> -> vector<8x192xf32>
    %75 = arith.addf %74, %43 : vector<8x192xf32>
    %76 = vector.extract_strided_slice %75 {offsets = [0, 0], sizes = [8, 96], strides = [1, 1]} : vector<8x192xf32> to vector<8x96xf32>
    %77 = vector.extract_strided_slice %75 {offsets = [0, 96], sizes = [8, 96], strides = [1, 1]} : vector<8x192xf32> to vector<8x96xf32>
    %78 = vector.extract_strided_slice %76 {offsets = [0, 0], sizes = [8, 32], strides = [1, 1]} : vector<8x96xf32> to vector<8x32xf32>
    %79 = vector.extract_strided_slice %77 {offsets = [0, 0], sizes = [8, 32], strides = [1, 1]} : vector<8x96xf32> to vector<8x32xf32>
    %80 = arith.addf %78, %79 : vector<8x32xf32>
    %81 = arith.negf %80 : vector<8x32xf32>
    %82 = math.exp %81 : vector<8x32xf32>
    %cst_22 = arith.constant 1.000000e+00 : f32
    %83 = vector.broadcast %cst_22 : f32 to vector<8x32xf32>
    %84 = arith.addf %83, %82 : vector<8x32xf32>
    %85 = arith.divf %83, %84 : vector<8x32xf32>
    %86 = vector.extract_strided_slice %76 {offsets = [0, 32], sizes = [8, 32], strides = [1, 1]} : vector<8x96xf32> to vector<8x32xf32>
    %87 = vector.extract_strided_slice %77 {offsets = [0, 32], sizes = [8, 32], strides = [1, 1]} : vector<8x96xf32> to vector<8x32xf32>
    %88 = arith.addf %86, %87 : vector<8x32xf32>
    %89 = arith.negf %88 : vector<8x32xf32>
    %90 = math.exp %89 : vector<8x32xf32>
    %cst_23 = arith.constant 1.000000e+00 : f32
    %91 = vector.broadcast %cst_23 : f32 to vector<8x32xf32>
    %92 = arith.addf %91, %90 : vector<8x32xf32>
    %93 = arith.divf %91, %92 : vector<8x32xf32>
    %94 = vector.extract_strided_slice %76 {offsets = [0, 64], sizes = [8, 32], strides = [1, 1]} : vector<8x96xf32> to vector<8x32xf32>
    %95 = vector.extract_strided_slice %77 {offsets = [0, 64], sizes = [8, 32], strides = [1, 1]} : vector<8x96xf32> to vector<8x32xf32>
    %96 = arith.mulf %85, %95 : vector<8x32xf32>
    %97 = arith.addf %94, %96 : vector<8x32xf32>
    %98 = math.tanh %97 : vector<8x32xf32>
    %cst_24 = arith.constant 1.000000e+00 : f32
    %99 = vector.broadcast %cst_24 : f32 to vector<8x32xf32>
    %100 = arith.subf %99, %93 : vector<8x32xf32>
    %101 = arith.mulf %100, %98 : vector<8x32xf32>
    %102 = arith.mulf %93, %73 : vector<8x32xf32>
    %103 = arith.addf %101, %102 : vector<8x32xf32>
    %c0_25 = arith.constant 0 : index
    %c0_26 = arith.constant 0 : index
    %104 = vector.load %arg7[%c0_25, %c0_26] : memref<32x16xf32, #tpu.memory_space<vmem>>, vector<32x16xf32>
    %cst_27 = arith.constant dense<0.000000e+00> : vector<8x16xf32>
    %105 = tpu.matmul %103, %104, %cst_27 {dimension_numbers = #tpu.dot_dimension_numbers<[1], [0], [0], [1], [0, 0, 1, 1], [], []>} : vector<8x32xf32>, vector<32x16xf32>, vector<8x16xf32> -> vector<8x16xf32>
    %c0_28 = arith.constant 0 : index
    %c0_29 = arith.constant 0 : index
    %106 = vector.load %arg8[%c0_28, %c0_29] : memref<1x16xf32, #tpu.memory_space<vmem>>, vector<1x16xf32>
    %107 = vector.broadcast %106 : vector<1x16xf32> to vector<8x16xf32>
    %108 = arith.addf %105, %107 : vector<8x16xf32>
    %cst_30 = arith.constant dense<0xFF800000> : vector<8xf32>
    %109 = vector.multi_reduction <maximumf>, %108, %cst_30 [1] : vector<8x16xf32> to vector<8xf32>
    %110 = vector.shape_cast %109 : vector<8xf32> to vector<8x1xf32>
    %111 = vector.broadcast %110 : vector<8x1xf32> to vector<8x16xf32>
    %112 = arith.subf %108, %111 : vector<8x16xf32>
    %113 = math.exp %112 : vector<8x16xf32>
    %cst_31 = arith.constant dense<0.000000e+00> : vector<8xf32>
    %114 = vector.multi_reduction <add>, %113, %cst_31 [1] : vector<8x16xf32> to vector<8xf32>
    %115 = vector.shape_cast %114 : vector<8xf32> to vector<8x1xf32>
    %116 = math.log %115 : vector<8x1xf32>
    %117 = arith.addf %110, %116 : vector<8x1xf32>
    %118 = vector.broadcast %117 : vector<8x1xf32> to vector<8x16xf32>
    %119 = arith.subf %108, %118 : vector<8x16xf32>
    %c0_32 = arith.constant 0 : index
    %c0_33 = arith.constant 0 : index
    %120 = vector.load %arg9[%c0_32, %c0_33] : memref<8x16xf32, #tpu.memory_space<vmem>>, vector<8x16xf32>
    tpu.vector_store %arg9[%c0_32, %c0_33], %119 {strides = array<i32>} : memref<8x16xf32, #tpu.memory_space<vmem>>, vector<8x16xf32>,
    %c0_34 = arith.constant 0 : index
    %c0_35 = arith.constant 0 : index
    %121 = vector.load %arg10[%c0_34, %c0_35] : memref<8x32xf32, #tpu.memory_space<vmem>>, vector<8x32xf32>
    tpu.vector_store %arg10[%c0_34, %c0_35], %103 {strides = array<i32>} : memref<8x32xf32, #tpu.memory_space<vmem>>, vector<8x32xf32>,
    return
  }
}

</mosaic_0001>

<bundles_post_ra>
// kernel: tpu_custom_call.1
= control target key start
LH: loop header
LB: loop body
LE: loop exit
PB: predicated region body
PF: predicated region fallthrough
CT: control target
= control target key end

     0   :  { %16 = vsyncpa [#allocation3], 0  ;;  %s1133_s0 = inlined_call_operand.vmem [shape: s32[8,1], index: 0, kind: input, shape index: {}]   ;;  %s1134_s1 = inlined_call_operand.hbm [shape: f32[8,32], index: 1, kind: input, shape index: {}]   ;;  %s1135_s2 = inlined_call_operand.hbm [shape: f32[16,96], index: 2, kind: input, shape index: {}]   ;;  %s1136_s3 = inlined_call_operand.hbm [shape: f32[32,96], index: 3, kind: input, shape index: {}]   ;;  %s1137_s4 = inlined_call_operand.vmem [shape: f32[1,96], index: 4, kind: input, shape index: {}]   ;;  %s1138_s5 = inlined_call_operand.vmem [shape: f32[32,192], index: 5, kind: input, shape index: {}]   ;;  %s1139_s6 = inlined_call_operand.vmem [shape: f32[1,192], index: 6, kind: input, shape index: {}]   ;;  %s1140_s7 = inlined_call_operand.vmem [shape: f32[32,16], index: 7, kind: input, shape index: {}]   ;;  %s1141_s8 = inlined_call_operand.vmem [shape: f32[1,16], index: 8, kind: input, shape index: {}]   ;;  %s1142_s9 = inlined_call_operand.hbm [shape: f32[8,16], index: 9, kind: output, shape index: {0}]   ;;  %s1143_s10 = inlined_call_operand.hbm [shape: f32[8,32], index: 10, kind: output, shape index: {1}]  }
   0x1   :  { %17 = vsyncpa [#allocation6], 0 }
   0x2   :  { %18 = vsyncpa [#allocation4], 0 }
   0x3   :  { %19 = vsyncpa [#allocation10], 0  ;;  %s908_s13 = smov [#allocation5]   ;;  %s790_s17 = scalar_lea.hbm %s1135_s2, 256 }
   0x4   :  { %s37_s14 = sshll.u32 %s908_s13, 4  ;;  %p791_p0 = scmp.ne.s32.totalorder %s1135_s2, %s790_s17  ;;  %s38_s14 = int_to_ptr.vmem [resolvable:$true] %s37_s14 }
   0x5   :  { %p794_p1 = scmp.lt.u32.totalorder %s790_s17, %s1135_s2 }
   0x7   :  { %p796_p2 = pnand %p794_p1, %p791_p0 }
   0x9   :  { %799 = shalt.err (!%p796_p2)
}
   0xa   :  { %s800_s22 = scalar_lea.vmem %s38_s14, 256  ;;  %p805_p4 = scmp.lt.s32.totalorder %s38_s14, %s38_s14 }
   0xb   :  { %p801_p3 = scmp.ne.s32.totalorder %s38_s14, %s800_s22  ;;  %p806_p5 = scmp.lt.s32.totalorder %s800_s22, %s800_s22 }
   0xd   :  { %p807_p6 = por %p806_p5, %p805_p4 }
   0xf   :  { %p808_p7 = pnand %p807_p6, %p801_p3 }
  0x11   :  { %811 = shalt.err (!%p808_p7)
}
  0x12   :  { %s909_s23 = smov 128   ;;  %s910_s24 = smov 8  }
  0x13   :  { %43 = dma.hbm_to_vmem [thread:$0]  %s1135_s2, 256, %s38_s14, [#allocation6], %s909_s23, %s909_s23, %s910_s24  }
  0x14   :  { %s911_s27 = smov [#allocation2]   ;;  %s912_s29 = smov [#allocation7]  }
  0x15   :  { %s28_s28 = sshll.u32 %s911_s27, 4  ;;  %s49_s30 = sshll.u32 %s912_s29, 4  ;;  %s29_s28 = int_to_ptr.vmem [resolvable:$true] %s28_s28  ;;  %s50_s30 = int_to_ptr.vmem [resolvable:$true] %s49_s30 }
  0x16   :  { %s812_s13 = scalar_lea.hbm %s1134_s1, 128 }
  0x17   :  { %p813_p8 = scmp.ne.s32.totalorder %s1134_s1, %s812_s13  ;;  %p816_p9 = scmp.lt.u32.totalorder %s812_s13, %s1134_s1 }
  0x19   :  { %p818_p10 = pnand %p816_p9, %p813_p8 }
  0x1b   :  { %821 = shalt.err (!%p818_p10)
}
  0x1c   :  { %s822_s2 = scalar_lea.vmem %s29_s28, 128  ;;  %p827_p12 = scmp.lt.s32.totalorder %s29_s28, %s29_s28 }
  0x1d   :  { %p823_p11 = scmp.ne.s32.totalorder %s29_s28, %s822_s2  ;;  %p828_p13 = scmp.lt.s32.totalorder %s822_s2, %s822_s2 }
  0x1f   :  { %p829_p0 = por %p828_p13, %p827_p12 }
  0x21   :  { %p830_p1 = pnand %p829_p0, %p823_p11 }
  0x23   :  { %833 = shalt.err (!%p830_p1)
}
  0x24   :  { %31 = dma.hbm_to_vmem [thread:$0]  %s1134_s1, 128, %s29_s28, [#allocation3]  }
  0x25   :  { %s834_s22 = scalar_lea.hbm %s1136_s3, 512 }
  0x26   :  { %p835_p2 = scmp.ne.s32.totalorder %s1136_s3, %s834_s22  ;;  %p838_p3 = scmp.lt.u32.totalorder %s834_s22, %s1136_s3 }
  0x28   :  { %p840_p4 = pnand %p838_p3, %p835_p2 }
  0x2a   :  { %843 = shalt.err (!%p840_p4)
}
  0x2b   :  { %s844_s11 = scalar_lea.vmem %s50_s30, 512  ;;  %p849_p6 = scmp.lt.s32.totalorder %s50_s30, %s50_s30 }
  0x2c   :  { %p845_p5 = scmp.ne.s32.totalorder %s50_s30, %s844_s11  ;;  %p850_p7 = scmp.lt.s32.totalorder %s844_s11, %s844_s11 }
  0x2e   :  { %p851_p8 = por %p850_p7, %p849_p6 }
  0x30   :  { %p852_p9 = pnand %p851_p8, %p845_p5 }
  0x32   :  { %855 = shalt.err (!%p852_p9)
}
  0x33   :  { %55 = dma.hbm_to_vmem [thread:$0]  %s1136_s3, 512, %s50_s30, [#allocation6], %s909_s23, %s909_s23, %s910_s24  }
  0x34   :  { %900 = dma.done.wait [#allocation3], 128  }
  0x35   :  { %901 = vsyncadd [#allocation3], 4294967168 }
  0x36   :  { %902 = dma.done.wait [#allocation6], 768  }
  0x37   :  { %903 = vsyncadd [#allocation6], 4294966528  ;;  %v913_v0 = vmov 0   ;;  %v914_v1 = vmov 0.0|0.0   ;;  %vm915_vm0 = vmmov 0   ;;  %v916_v2 = vmov 0.0  }
  0x38   :  { %759 = vset.pattern.permute.xlu0 %v913_v0  ;;  %717 = vmatprep.subr.bf16.mxu1 %v914_v1  ;;  %v76_v3 = vld [vmem:[%s1133_s0] sm:$0xff]  ;;  %v161_v4 = vld [vmem:[#allocation7] sm:$0xff]  ;;  %v162_v5 = vld [vmem:[#allocation7 + $0x8] sm:$0xff]  ;;  %vm172_vm1 = vcmask 261120   ;;  %v77_v14 = vlaneseq  ;;  %vm87_vm2 = vcmask 130048   ;;  %s917_s30 = smov 64  }
  0x39   :  { %700 = vmatprep.mubr.msk.f32.mxu1 %vm915_vm0, %v916_v2  ;;  %714 = vmatprep.subr.bf16.mxu0 %v914_v1  ;;  %v718_v6 = vpack.c.bf16 %v162_v5, %v161_v4  ;;  %v163_v7 = vld [vmem:[#allocation7 + $0x10] sm:$0xff]  ;;  %v164_v8 = vld [vmem:[#allocation7 + $0x18] sm:$0xff]  ;;  %v75_v13 = vld [vmem:[#allocation2] sm:$0xff]  ;;  %s918_s12 = smov 32   ;;  %s919_s11 = smov 96  }
  0x3a   :  { %689 = vmatprep.mubr.msk.f32.mxu0 %vm915_vm0, %v916_v2  ;;  %80 = vperm.xlu0 %759, %v76_v3   ;;  %v85_v9 = vld [vmem:[#allocation5] sm:$0xff]  ;;  %v86_v10 = vld [vmem:[#allocation5 + $0x8] sm:$0xff]  ;;  %v721_v11 = vpack.c.bf16 %v164_v8, %v163_v7  ;;  %v78_v15 = vand.u32 127, %v77_v14  ;;  %v278_v34 = vld [vmem:[%s1138_s5 + $0x18] sm:$0xff]  ;;  %v286_v53 = vshrl.u32 %v77_v14, 7  ;;  %s920_s13 = smov [#allocation9]  }
  0x3b   :  { %719 = vmatpush3.bf16.msra.mxu1 %v718_v6  ;;  %v715_v12 = vpack.c.bf16 %v86_v10, %v85_v9  ;;  %v661_v18 = vld [vmem:[%s1137_s4] ss:$0 sm:$0xff]  ;;  %v276_v33 = vld [vmem:[%s1138_s5 + $0x8] sm:$0xff]  ;;  %v277_v37 = vld [vmem:[%s1138_s5 + $0x10] sm:$0xff]  ;;  %s645_s15 = sshll.u32 %s920_s13, 4  ;;  %s646_s15 = int_to_ptr.vmem [resolvable:$true] %s645_s15 }
  0x3c   :  { %720 = vmatprep.subr.bf16.mxu1 %v914_v1  ;;  %v275_v35 = vld [vmem:[%s1138_s5] sm:$0xff]  ;;  %v723_v36 = vpack.c.bf16 %v278_v34, %v276_v33  ;;  %v280_v38 = vld [vmem:[%s1138_s5 + $0x28] sm:$0xff]  ;;  %v282_v39 = vld [vmem:[%s1138_s5 + $0x38] sm:$0xff]  ;;  %v287_v54 = vsub.s32 0, %v286_v53  ;;  %v291_v56 = vsub.s32 1, %v286_v53  ;;  %s856_s16 = scalar_lea.vmem %s646_s15, 128  ;;  %p861_p11 = scmp.lt.s32.totalorder %s646_s15, %s646_s15 }
  0x3d   :  { %716 = vmatpush3.bf16.msra.mxu0 %v715_v12  ;;  %v725_v40 = vpack.c.bf16 %v277_v37, %v275_v35  ;;  %v727_v41 = vpack.c.bf16 %v282_v39, %v280_v38  ;;  %v279_v42 = vld [vmem:[%s1138_s5 + $0x20] sm:$0xff]  ;;  %v281_v43 = vld [vmem:[%s1138_s5 + $0x30] sm:$0xff]  ;;  %v528_v38 = vld [vmem:[%s1140_s7 + $0x8] sm:$0xff]  ;;  %p857_p10 = scmp.ne.s32.totalorder %s646_s15, %s856_s16  ;;  %p862_p12 = scmp.lt.s32.totalorder %s856_s16, %s856_s16 }
  0x3e   :  { %724 = vmatprep.subr.bf16.mxu0 %v723_v36  ;;  %v729_v44 = vpack.c.bf16 %v281_v43, %v279_v42  ;;  %v283_v55 = vld [vmem:[%s1139_s6] sm:$0x3]  ;;  %v529_v39 = vld [vmem:[%s1140_s7 + $0x10] sm:$0xff] }
  0x3f   :  { %722 = vmatpush3.bf16.msra.mxu1 %v721_v11  ;;  %v288_v57 = vrot.slane %v283_v55, %v287_v54  ;;  %v292_v58 = vrot.slane %v283_v55, %v291_v56  ;;  %v527_v37 = vld [vmem:[%s1140_s7] sm:$0xff]  ;;  %p863_p13 = por %p862_p12, %p861_p11 }
  0x40   :  { %732 = vmatprep.subr.bf16.mxu1 %v723_v36  ;;  %v670_v55 = vld [vmem:[%s1141_s8] ss:$0 sm:$0xff] }
  0x41   :  { %p864_p0 = pnand %p863_p13, %p857_p10 }
  0x42   :  { %701 = vmatmul.mubr.msk.f32.vlgmr.msra.gmra.mrb[0].mxu1 %vm172_vm1, %v75_v13 }
  0x43   :  { %480 = vmatprep.mubr.f32.mxu1 %v916_v2  ;;  %734 = vmatpush1.bf16.msra.mxu1 %v725_v40 }
  0x44   :  { %736 = vmatprep.subr.bf16.mxu1 %v727_v41 }
  0x47   :  { %738 = vmatpush1.bf16.msra.mxu1 %v729_v44 }
  0xb9   :  { %v81_v16 = vpop.permute.xlu0 %80 }
  0xba   :  { %vm82_vm3 = vcmp.eq.s32.totalorder %v78_v15, %v81_v16 }
  0xbb   :  { %v659_v17 = vsel %vm82_vm3, 1.0, %v916_v2 }
  0xbc   :  { %690 = vmatmul.mubr.msk.f32.vlgmr.msra.gmra.mrb[0].mxu0 %vm87_vm2, %v659_v17 }
  0xbd   :  { %364 = vmatprep.mubr.f32.mxu0 %v916_v2  ;;  %726 = vmatpush1.bf16.msra.mxu0 %v725_v40  ;;  %v740_v40 = vpack.c.bf16 %v528_v38, %v527_v37 }
  0xbe   :  { %728 = vmatprep.subr.bf16.mxu0 %v727_v41  ;;  %v530_v41 = vld [vmem:[%s1140_s7 + $0x18] sm:$0xff] }
  0xbf   :  { %v743_v42 = vpack.c.bf16 %v530_v41, %v529_v39 }
  0xc1   :  { %730 = vmatpush1.bf16.msra.mxu0 %v729_v44 }
  0xc2   :  { %739 = vmatprep.subr.bf16.mxu0 %v914_v1 }
 0x115   :  { %v242_v19 = vpop.f32.mrb[0].mxu1 }
 0x116   :  { %v243_v20 = vadd.f32 %v661_v18, %v242_v19  ;;  %v702_v21 = vpop.f32.mrb[1].mxu1 }
 0x118   :  { %254 = vrot.lane.b32.xlu0 %v243_v20, %s917_s30 }
 0x11c   :  { %270 = vrot.lane.b32.xlu0 %v75_v13, %s918_s12 }
 0x18a   :  { %v255_v29 = vpop.permute.xlu0 %254 }
 0x18e   :  { %v271_v46 = vpop.permute.xlu0 %270 }
 0x18f   :  { %v157_v22 = vpop.f32.mrb[0].mxu0 }
 0x190   :  { %v246_v23 = vadd.f32 %v243_v20, %v157_v22  ;;  %v691_v24 = vpop.f32.mrb[1].mxu0 }
 0x192   :  { %v663_v25 = vmul.f32 -1.442695, %v246_v23 }
 0x194   :  { %760 = vpow2.f32 %v663_v25 }
 0x19e   :  { %v761_v26 = vpop.eup %760 }
 0x19f   :  { %v250_v27 = vadd.f32 1.0, %v761_v26 }
 0x1a1   :  { %762 = vrcp.f32 %v250_v27 }
 0x1ab   :  { %v763_v28 = vpop.eup %762 }
 0x1ac   :  { %v257_v30 = vmul.f32 %v763_v28, %v255_v29  ;;  %v264_v47 = vsub.f32 1.0, %v763_v28  ;;  %v273_v49 = vmul.f32 %v763_v28, %v271_v46 }
 0x1ae   :  { %259 = vrot.lane.b32.xlu1 %v257_v30, %s917_s30 }
 0x220   :  { %v260_v31 = vpop.permute.xlu1 %259 }
 0x221   :  { %v262_v32 = vadd.f32 %v260_v31, %v157_v22 }
 0x223   :  { %764 = vtanh.f32 %v262_v32 }
 0x22d   :  { %v765_v45 = vpop.eup %764 }
 0x22e   :  { %266 = vrot.lane.b32.xlu1 %v765_v45, %s919_s11 }
 0x2a0   :  { %v267_v48 = vpop.permute.xlu1 %266 }
 0x2a1   :  { %v269_v50 = vmul.f32 %v267_v48, %v264_v47 }
 0x2a3   :  { %v274_v51 = vadd.f32 %v273_v49, %v269_v50 }
 0x2a5   :  { %296 = vrot.lane.b32.xlu1 %v274_v51, %s919_s11 }
 0x317   :  { %v297_v52 = vpop.permute.xlu1 %296 }
 0x318   :  { %664 = vmatmul.mubr.msk.f32.vlgmr.msra.gmra.mrb[2].mxu0 %vm172_vm1, %v297_v52 }
 0x319   :  { %711 = vmatprep.mubr.msk.f32.mxu0 %vm915_vm0, %v916_v2  ;;  %741 = vmatpush3.bf16.msra.mxu0 %v740_v40 }
 0x31a   :  { %742 = vmatprep.subr.bf16.mxu0 %v914_v1 }
 0x31d   :  { %744 = vmatpush3.bf16.msra.mxu0 %v743_v42 }
 0x3eb   :  { %v366_v59 = vpop.f32.mrb[2].mxu0 }
 0x3ec   :  { %v367_v60 = vadd.f32 %v366_v59, %v288_v57  ;;  %v368_v61 = vpop.f32.mrb[3].mxu0 }
 0x3ed   :  { %v369_v62 = vadd.f32 %v368_v61, %v292_v58 }
 0x3ee   :  { %372 = vrot.lane.b32.xlu0 %v367_v60, %s918_s12 }
 0x3ef   :  { %393 = vrot.lane.b32.xlu1 %v369_v62, %s919_s11 }
 0x3f3   :  { %383 = vrot.lane.b32.xlu1 %v369_v62, %s918_s12 }
 0x460   :  { %v373_v63 = vpop.permute.xlu0 %372 }
 0x461   :  { %v375_v0 = vadd.f32 %v373_v63, %v367_v60  ;;  %v394_v6 = vpop.permute.xlu1 %393 }
 0x463   :  { %v665_v2 = vmul.f32 -1.442695, %v375_v0 }
 0x465   :  { %766 = vpow2.f32 %v665_v2  ;;  %v384_v11 = vpop.permute.xlu1 %383 }
 0x466   :  { %v386_v12 = vadd.f32 %v384_v11, %v367_v60 }
 0x468   :  { %v666_v13 = vmul.f32 -1.442695, %v386_v12 }
 0x46f   :  { %v767_v3 = vpop.eup %766 }
 0x470   :  { %v379_v4 = vadd.f32 1.0, %v767_v3 }
 0x472   :  { %768 = vrcp.f32 %v379_v4 }
 0x47c   :  { %v769_v5 = vpop.eup %768 }
 0x47d   :  { %v396_v7 = vmul.f32 %v769_v5, %v394_v6 }
 0x47f   :  { %398 = vrot.lane.b32.xlu0 %v396_v7, %s917_s30 }
 0x4f1   :  { %v399_v8 = vpop.permute.xlu0 %398 }
 0x4f2   :  { %v401_v9 = vadd.f32 %v399_v8, %v367_v60 }
 0x4f4   :  { %770 = vtanh.f32 %v401_v9 }
 0x4f5   :  { %772 = vpow2.f32 %v666_v13 }
 0x4fe   :  { %v771_v10 = vpop.eup %770 }
 0x4ff   :  { %405 = vrot.lane.b32.xlu0 %v771_v10, %s919_s11  ;;  %v773_v14 = vpop.eup %772 }
 0x500   :  { %v390_v15 = vadd.f32 1.0, %v773_v14 }
 0x502   :  { %774 = vrcp.f32 %v390_v15 }
 0x50c   :  { %v775_v16 = vpop.eup %774 }
 0x50d   :  { %v403_v17 = vsub.f32 1.0, %v775_v16  ;;  %v409_v20 = vmul.f32 %v775_v16, %v274_v51 }
 0x571   :  { %v406_v18 = vpop.permute.xlu0 %405 }
 0x572   :  { %v408_v19 = vmul.f32 %v406_v18, %v403_v17 }
 0x574   :  { %v410_v21 = vadd.f32 %v409_v20, %v408_v19 }
 0x576   :  { %412 = vrot.lane.b32.xlu1 %v410_v21, %s919_s11 }
 0x5e8   :  { %v413_v22 = vpop.permute.xlu1 %412 }
 0x5e9   :  { %667 = vmatmul.mubr.msk.f32.vlgmr.msra.gmra.mrb[2].mxu1 %vm172_vm1, %v413_v22 }
 0x6bc   :  { %v482_v23 = vpop.f32.mrb[2].mxu1 }
 0x6bd   :  { %v483_v24 = vadd.f32 %v482_v23, %v288_v57  ;;  %v484_v25 = vpop.f32.mrb[3].mxu1 }
 0x6be   :  { %v485_v26 = vadd.f32 %v484_v25, %v292_v58 }
 0x6bf   :  { %488 = vrot.lane.b32.xlu0 %v483_v24, %s918_s12 }
 0x6c0   :  { %509 = vrot.lane.b32.xlu1 %v485_v26, %s919_s11 }
 0x6c4   :  { %499 = vrot.lane.b32.xlu1 %v485_v26, %s918_s12 }
 0x731   :  { %v489_v27 = vpop.permute.xlu0 %488 }
 0x732   :  { %v491_v28 = vadd.f32 %v489_v27, %v483_v24  ;;  %v510_v33 = vpop.permute.xlu1 %509 }
 0x734   :  { %v668_v29 = vmul.f32 -1.442695, %v491_v28 }
 0x736   :  { %776 = vpow2.f32 %v668_v29  ;;  %v500_v44 = vpop.permute.xlu1 %499 }
 0x737   :  { %v502_v45 = vadd.f32 %v500_v44, %v483_v24 }
 0x739   :  { %v669_v46 = vmul.f32 -1.442695, %v502_v45 }
 0x740   :  { %v777_v30 = vpop.eup %776 }
 0x741   :  { %v495_v31 = vadd.f32 1.0, %v777_v30 }
 0x743   :  { %778 = vrcp.f32 %v495_v31 }
 0x74d   :  { %v779_v32 = vpop.eup %778 }
 0x74e   :  { %v512_v34 = vmul.f32 %v779_v32, %v510_v33 }
 0x750   :  { %514 = vrot.lane.b32.xlu0 %v512_v34, %s917_s30 }
 0x7c2   :  { %v515_v35 = vpop.permute.xlu0 %514 }
 0x7c3   :  { %v517_v36 = vadd.f32 %v515_v35, %v483_v24 }
 0x7c5   :  { %780 = vtanh.f32 %v517_v36 }
 0x7c6   :  { %782 = vpow2.f32 %v669_v46 }
 0x7cf   :  { %v781_v43 = vpop.eup %780 }
 0x7d0   :  { %521 = vrot.lane.b32.xlu0 %v781_v43, %s919_s11  ;;  %v783_v47 = vpop.eup %782 }
 0x7d1   :  { %v506_v48 = vadd.f32 1.0, %v783_v47 }
 0x7d3   :  { %784 = vrcp.f32 %v506_v48 }
 0x7dd   :  { %v785_v49 = vpop.eup %784 }
 0x7de   :  { %v519_v50 = vsub.f32 1.0, %v785_v49  ;;  %v525_v53 = vmul.f32 %v785_v49, %v410_v21 }
 0x842   :  { %v522_v51 = vpop.permute.xlu0 %521 }
 0x843   :  { %v524_v52 = vmul.f32 %v522_v51, %v519_v50 }
 0x845   :  { %v526_v54 = vadd.f32 %v525_v53, %v524_v52 }
 0x847   :  { %539 = vrot.lane.b32.xlu1 %v526_v54, %s919_s11 }
 0x8b9   :  { %v540_v1 = vpop.permute.xlu1 %539 }
 0x8ba   :  { %628 = vst.msk [vmem:[#allocation9] sm:$0xff] %vm172_vm1, %v540_v1  ;;  %712 = vmatmul.mubr.msk.f32.vlgmr.msra.gmra.mrb[4].mxu0 %vm172_vm1, %v540_v1 }
 0x98d   :  { %v609_v56 = vpop.f32.mrb[4].mxu0 }
 0x98e   :  { %v610_v57 = vadd.f32 %v670_v55, %v609_v56  ;;  %v713_v58 = vpop.f32.mrb[5].mxu0 }
 0x990   :  { %v613_v59 = vsel %vm87_vm2, %v610_v57, -inf }
 0x991   :  { %614 = vmax.xlane.f32.xlu0 %v613_v59 }
 0xa1e   :  { %v615_v60 = vpop.xlane.xlu0 %614 }
 0xa1f   :  { %v616_v61 = vsub.f32 %v610_v57, %v615_v60 }
 0xa21   :  { %v617_v62 = vmul.f32 1.442695, %v616_v61 }
 0xa23   :  { %786 = vpow2.f32 %v617_v62 }
 0xa2d   :  { %v787_v63 = vpop.eup %786 }
 0xa2e   :  { %v619_v0 = vsel %vm87_vm2, %v787_v63, 0.0 }
 0xa2f   :  { %620 = vadd.xlane.f32.xlu1 %v619_v0 }
 0xa30   :  { %867 = shalt.err (!%p864_p0)
}
 0xa31   :  { %s868_s18 = scalar_lea.hbm %s1143_s10, 128 }
 0xa32   :  { %p869_p1 = scmp.ne.s32.totalorder %s1143_s10, %s868_s18  ;;  %p872_p2 = scmp.lt.u32.totalorder %s868_s18, %s1143_s10 }
 0xa34   :  { %p874_p3 = pnand %p872_p2, %p869_p1 }
 0xa36   :  { %877 = shalt.err (!%p874_p3)
}
 0xa37   :  { %648 = dma.vmem_to_hbm [thread:$0]  %s646_s15, 128, %s1143_s10, [#allocation10]  }
 0xa38   :  { %s921_s25 = smov [#allocation8]  }
 0xa39   :  { %s635_s26 = sshll.u32 %s921_s25, 4  ;;  %s636_s26 = int_to_ptr.vmem [resolvable:$true] %s635_s26 }
 0xa3a   :  { %s878_s27 = scalar_lea.vmem %s636_s26, 128  ;;  %p883_p5 = scmp.lt.s32.totalorder %s636_s26, %s636_s26 }
 0xa3b   :  { %p879_p4 = scmp.ne.s32.totalorder %s636_s26, %s878_s27  ;;  %p884_p6 = scmp.lt.s32.totalorder %s878_s27, %s878_s27 }
 0xa3d   :  { %p885_p7 = por %p884_p6, %p883_p5 }
 0xa3f   :  { %p886_p8 = pnand %p885_p7, %p879_p4 }
 0xabc   :  { %v621_v2 = vpop.xlane.xlu1 %620 }
 0xabd   :  { %788 = vlog2.f32 %v621_v2 }
 0xac7   :  { %v789_v3 = vpop.eup %788 }
 0xac8   :  { %v623_v4 = vmul.f32 0.6931472, %v789_v3 }
 0xaca   :  { %v624_v5 = vadd.f32 %v623_v4, %v615_v60 }
 0xacc   :  { %v625_v6 = vsub.f32 %v610_v57, %v624_v5 }
 0xace   :  { %626 = vst.msk [vmem:[#allocation8] sm:$0xff] %vm87_vm2, %v625_v6 }
 0xacf   :  { %889 = shalt.err (!%p886_p8)
}
 0xad0   :  { %s890_s11 = scalar_lea.hbm %s1142_s9, 128 }
 0xad1   :  { %p891_p9 = scmp.ne.s32.totalorder %s1142_s9, %s890_s11  ;;  %p894_p10 = scmp.lt.u32.totalorder %s890_s11, %s1142_s9 }
 0xad3   :  { %p896_p11 = pnand %p894_p10, %p891_p9 }
 0xad5   :  { %899 = shalt.err (!%p896_p11)
}
 0xad6   :  { %638 = dma.vmem_to_hbm [thread:$0]  %s636_s26, 128, %s1142_s9, [#allocation4]  }
 0xad7   :  { %904 = dma.done.wait [#allocation4], 128  }
 0xad8   :  { %905 = vsyncadd [#allocation4], 4294967168 }
 0xad9   :  { %906 = dma.done.wait [#allocation10], 128  }
 0xada   :  { %907 = vsyncadd [#allocation10], 4294967168 }
 0xadb   :  { %655 = vsyncpa [#allocation3], 1 }
 0xadc   :  { %656 = vsyncpa [#allocation6], 1 }
 0xadd   :  { %657 = vsyncpa [#allocation4], 1 }
 0xade   :  { %658 = vsyncpa [#allocation10], 1 }

</bundles_post_ra>
